<compile_context>
chip_gen: v6e
topology: v6e:2x2x1
jax: 0.10.0
libtpu: 0.0.40
codegen_flags: <defaults>
</compile_context>

<pallas_src>
import jax
import jax.numpy as jnp
from jax.experimental import pallas as pl
from jax.experimental.pallas import tpu as pltpu

# ----------------------------- configuration -------------------------------
B, T = 2, 8                       # batch, time
INPUT_DIMS = (16, 8, 24)          # text, audio, visual feature dims
BEATS_DIM = 8                     # unused modality (matches reference forward)
EMBED = 32                        # opt.embed_dim
D_STATE = 16
EXPAND = 2
D_INNER = EXPAND * EMBED          # 64
DT_RANK = max(1, EMBED // 16)     # 2
CELL = 16                         # opt.output_cell_dim
N_CLASSES = 4                     # opt.output_dim
NUM_LAYERS = 2                    # opt.num_layers

TOTAL_IN = sum(INPUT_DIMS)        # 48
NDIR = 2                          # bimamba v2: forward + backward branch
LANES = NDIR * D_INNER            # 128 -> exactly one vreg lane-width
OUT_LANES = 128                   # lane-dense output slab (logits in lanes 0..3)

# x_proj column layout (dt_proj folded in, 16-aligned segments):
#   [ dt_pre (128) | B_f (16) | C_f (16) | B_b (16) | C_b (16) ]
_BF0 = LANES                      # 128
_CF0 = _BF0 + D_STATE             # 144
_BB0 = _CF0 + D_STATE             # 160
_CB0 = _BB0 + D_STATE             # 176
XP_COLS = _CB0 + D_STATE          # 192


def _sigmoid(v):
    # overflow-free, EUP-routed:  sigmoid(v) = 0.5 * (tanh(v/2) + 1)
    return 0.5 * (jnp.tanh(0.5 * v) + 1.0)


def _softplus(v):
    return jnp.maximum(v, 0.0) + jnp.log1p(jnp.exp(-jnp.abs(v)))


# ------------------------------- fused kernel --------------------------------
def _forward_kernel(*refs):
    xin_ref, wproj_ref, bproj_ref = refs[0:3]
    layer_refs = refs[3:3 + 3 * NUM_LAYERS]
    w1_ref, b1_ref, w2_ref, b2_ref = refs[3 + 3 * NUM_LAYERS:3 + 3 * NUM_LAYERS + 4]
    out_ref = refs[-1]
    n = xin_ref.shape[0]

    # ---- modality fusion: ReLU(Linear), L2-normalize, norm-softmax weights --
    reps = jnp.dot(xin_ref[...].astype(jnp.bfloat16), wproj_ref[...],
                   preferred_element_type=jnp.float32) + bproj_ref[...]
    reps = jnp.maximum(reps, 0.0)                         # (n, 3*EMBED)
    r0 = reps[:, 0 * EMBED:1 * EMBED]
    r1 = reps[:, 1 * EMBED:2 * EMBED]
    r2 = reps[:, 2 * EMBED:3 * EMBED]
    n0 = jnp.sqrt(jnp.sum(r0 * r0, axis=-1, keepdims=True))
    n1 = jnp.sqrt(jnp.sum(r1 * r1, axis=-1, keepdims=True))
    n2 = jnp.sqrt(jnp.sum(r2 * r2, axis=-1, keepdims=True))
    m = jnp.maximum(jnp.maximum(n0, n1), n2)
    e0 = jnp.exp(n0 - m)
    e1 = jnp.exp(n1 - m)
    e2 = jnp.exp(n2 - m)
    inv_den = pl.reciprocal(e0 + e1 + e2, approx=True)
    cur = (e0 * r0 * pl.reciprocal(jnp.maximum(n0, 1e-12), approx=True)
           + e1 * r1 * pl.reciprocal(jnp.maximum(n1, 1e-12), approx=True)
           + e2 * r2 * pl.reciprocal(jnp.maximum(n2, 1e-12), approx=True)) * inv_den

    # ---- Mamba blocks (seq len 1, zero initial SSM state), unrolled ---------
    lane = jax.lax.broadcasted_iota(jnp.int32, (n, LANES), 1)
    fwd_half = lane < D_INNER
    for layer in range(NUM_LAYERS):
        win_ref, vecs_ref, xprj_ref = layer_refs[3 * layer:3 * layer + 3]
        # win: layer 0 = [Wx|Wx|Wz]; layers>0 = wout_{l-1} @ [Wx|Wx|Wz]  (fused)
        xz = jnp.dot(cur.astype(jnp.bfloat16), win_ref[...],
                     preferred_element_type=jnp.float32)   # (n, 192)
        xi2 = xz[:, :LANES]        # (n, 128) = [x | x] packed for both dirs
        z = xz[:, LANES:]          # (n, 64)
        gate = z * _sigmoid(z)     # SiLU(z)

        vecs = vecs_ref[...]       # (4, 128): conv w, conv b, dt bias, D skip
        cw = vecs[0:1, :]
        cb = vecs[1:2, :]
        dtb = vecs[2:3, :]
        dsk = vecs[3:4, :]
        # seq len 1: causal depthwise conv == its last tap only.
        xcv = xi2 * cw + cb
        xcv = xcv * _sigmoid(xcv)                                   # SiLU

        # single projection: dt pre-act (dt_proj folded) + B/C, both directions
        prj = jnp.dot(xcv.astype(jnp.bfloat16), xprj_ref[...],
                      preferred_element_type=jnp.float32)           # (n, 192)
        dt = _softplus(prj[:, :LANES] + dtb)                        # (n, 128)
        # one SSM step from zero state: h = dt*B*x ; y = C.h + D*x
        bc_f = jnp.sum(prj[:, _BF0:_CF0] * prj[:, _CF0:_BB0],
                       axis=-1, keepdims=True)
        bc_b = jnp.sum(prj[:, _BB0:_CB0] * prj[:, _CB0:],
                       axis=-1, keepdims=True)
        bc = jnp.where(fwd_half, bc_f, bc_b)                        # (n, 128)

        y = dt * xcv * bc + dsk * xcv                               # [y_f | y_b]
        cur = (y[:, :D_INNER] + y[:, D_INNER:]) * gate              # (n, 64)
        # out_proj is pre-composed into the next layer's win / head w1.

    # ---- SimpleNet head (Linear->ReLU->Linear->Tanh) + log_softmax ----------
    hh = jnp.maximum(jnp.dot(cur.astype(jnp.bfloat16), w1_ref[...],
                             preferred_element_type=jnp.float32) + b1_ref[...],
                     0.0)
    o = jnp.tanh(jnp.dot(hh.astype(jnp.bfloat16), w2_ref[...],
                         preferred_element_type=jnp.float32) + b2_ref[...])
    lane_o = jax.lax.broadcasted_iota(jnp.int32, (n, OUT_LANES), 1)
    o = jnp.where(lane_o < N_CLASSES, o, -1e30)       # mask padded logit lanes
    mx = jnp.max(o, axis=-1, keepdims=True)
    lse = jnp.log(jnp.sum(jnp.exp(o - mx), axis=-1, keepdims=True)) + mx
    out_ref[...] = o - lse


# ------------------------------ wrappers --------------------------------------
def _vmem_spec():
    return pl.BlockSpec(memory_space=pltpu.MemorySpace.VMEM)


def _forward_call(xin, params):
    n = xin.shape[0]
    args = [xin, params["wproj"], params["bproj"]]
    for lp in params["layers"]:
        args.extend(lp)
    args.extend(params["head"])
    return pl.pallas_call(
        _forward_kernel,
        out_shape=jax.ShapeDtypeStruct((n, OUT_LANES), jnp.float32),
        in_specs=[_vmem_spec() for _ in args],
        out_specs=_vmem_spec(),
    )(*args)


@jax.jit
def baseline_mamba_forward(text, audio, beats, visual, params):
    del beats  # the reference forward ignores the 'beats' modality
    bsz, ts = text.shape[:2]
    n = bsz * ts
    xin = jnp.concatenate([text.reshape(n, -1),
                           audio.reshape(n, -1),
                           visual.reshape(n, -1)], axis=-1).astype(jnp.float32)
    logp = _forward_call(xin, params)
    return logp[:, :N_CLASSES].reshape(bsz, ts, N_CLASSES)


# --------------------------- parameter init (packed) --------------------------
def init_params(key):
    keys = iter(jax.random.split(key, 64))

    def lin(shape, scale=None):
        s = scale if scale is not None else 1.0 / float(shape[0]) ** 0.5
        return jax.random.uniform(next(keys), shape, jnp.float32, -1.0, 1.0) * s

    # fused modality projections: block-diagonal weight + concatenated bias
    wproj = jnp.zeros((TOTAL_IN, 3 * EMBED), jnp.float32)
    bias_parts = []
    off = 0
    for i, d in enumerate(INPUT_DIMS):
        wproj = wproj.at[off:off + d, i * EMBED:(i + 1) * EMBED].set(
            lin((d, EMBED)))
        bias_parts.append(lin((1, EMBED), 1.0 / float(d) ** 0.5))
        off += d
    bproj = jnp.concatenate(bias_parts, axis=-1)                  # (1, 96)

    def direction():
        return dict(cw=lin((1, D_INNER), 0.5),    # conv last-tap weight
                    cb=lin((1, D_INNER), 0.1),    # conv bias
                    xdt=lin((D_INNER, DT_RANK)),  # x_proj -> dt
                    xb=lin((D_INNER, D_STATE)),   # x_proj -> B
                    xc=lin((D_INNER, D_STATE)),   # x_proj -> C
                    wdt=lin((DT_RANK, D_INNER)),  # dt_proj weight
                    bdt=lin((1, D_INNER), 0.1),   # dt_proj bias
                    dsk=jnp.ones((1, D_INNER), jnp.float32))  # D skip

    raw = []
    for _ in range(NUM_LAYERS):
        wx = lin((EMBED, D_INNER))
        wz = lin((EMBED, D_INNER))
        win = jnp.concatenate([wx, wx, wz], axis=-1)              # (32, 192)

        f, b = direction(), direction()                           # fwd / bwd
        vecs = jnp.concatenate(
            [jnp.concatenate([f[k], b[k]], axis=-1)
             for k in ("cw", "cb", "bdt", "dsk")], axis=0)        # (4, 128)

        # x_proj with dt_proj folded in (block-diagonal per direction)
        xp = jnp.zeros((LANES, XP_COLS), jnp.float32)
        xp = xp.at[:D_INNER, :D_INNER].set(f["xdt"] @ f["wdt"])
        xp = xp.at[D_INNER:, D_INNER:LANES].set(b["xdt"] @ b["wdt"])
        xp = xp.at[:D_INNER, _BF0:_CF0].set(f["xb"])
        xp = xp.at[:D_INNER, _CF0:_BB0].set(f["xc"])
        xp = xp.at[D_INNER:, _BB0:_CB0].set(b["xb"])
        xp = xp.at[D_INNER:, _CB0:].set(b["xc"])

        wout = lin((D_INNER, EMBED))                              # (64, 32)
        raw.append((win, vecs, xp, wout))

    # compose out_proj into the next layer's in_proj (exact linear rewrite)
    layers = []
    prev_wout = None
    for win, vecs, xp, wout in raw:
        if prev_wout is not None:
            win = prev_wout @ win                                 # (64, 192)
        layers.append((win.astype(jnp.bfloat16), vecs, xp.astype(jnp.bfloat16)))
        prev_wout = wout

    # head: last out_proj composed into the first head Linear; w2/b2 lane-padded
    w1 = prev_wout @ lin((EMBED, CELL))                           # (64, 16)
    b1 = lin((1, CELL), 0.1)
    w2 = jnp.zeros((CELL, OUT_LANES), jnp.float32)
    w2 = w2.at[:, :N_CLASSES].set(lin((CELL, N_CLASSES)))
    b2 = jnp.zeros((1, OUT_LANES), jnp.float32)
    b2 = b2.at[:, :N_CLASSES].set(lin((1, N_CLASSES), 0.1))

    return {
        "wproj": wproj.astype(jnp.bfloat16), "bproj": bproj,
        "layers": layers,
        "head": (w1.astype(jnp.bfloat16), b1, w2.astype(jnp.bfloat16), b2),
    }


# --------------------------------- main ---------------------------------------
if __name__ == "__main__":
    key = jax.random.PRNGKey(0)
    kt, ka, kb, kv, kp = jax.random.split(key, 5)
    text = jax.random.normal(kt, (B, T, INPUT_DIMS[0]), jnp.float32)
    audio = jax.random.normal(ka, (B, T, INPUT_DIMS[1]), jnp.float32)
    beats = jax.random.normal(kb, (B, T, BEATS_DIM), jnp.float32)
    visual = jax.random.normal(kv, (B, T, INPUT_DIMS[2]), jnp.float32)

    params = init_params(kp)
    out = baseline_mamba_forward(text, audio, beats, visual, params)
    out = jax.block_until_ready(out)

    assert out.shape == (B, T, N_CLASSES), out.shape
    # log-softmax rows must sum to 1 in prob space
    assert bool(jnp.allclose(jnp.sum(jnp.exp(out), axis=-1), 1.0, atol=1e-4))
    print("KERNEL_OK")
</pallas_src>

<mosaic_0001>
module attributes {stable_mosaic.version = 11 : i64} {
  func.func @_forward_kernel(%arg0: memref<16x48xf32, #tpu.memory_space<vmem>>, %arg1: memref<48x96xbf16, #tpu.memory_space<vmem>>, %arg2: memref<1x96xf32, #tpu.memory_space<vmem>>, %arg3: memref<32x192xbf16, #tpu.memory_space<vmem>>, %arg4: memref<4x128xf32, #tpu.memory_space<vmem>>, %arg5: memref<128x192xbf16, #tpu.memory_space<vmem>>, %arg6: memref<64x192xbf16, #tpu.memory_space<vmem>>, %arg7: memref<4x128xf32, #tpu.memory_space<vmem>>, %arg8: memref<128x192xbf16, #tpu.memory_space<vmem>>, %arg9: memref<64x16xbf16, #tpu.memory_space<vmem>>, %arg10: memref<1x16xf32, #tpu.memory_space<vmem>>, %arg11: memref<16x128xbf16, #tpu.memory_space<vmem>>, %arg12: memref<1x128xf32, #tpu.memory_space<vmem>>, %arg13: memref<16x128xf32, #tpu.memory_space<vmem>>) attributes {dimension_semantics = [], scalar_prefetch = 0 : i64, scratch_operands = 0 : i64, tpu.core_type = #tpu.core_type<tc>} {
    %c0 = arith.constant 0 : index
    %c0_0 = arith.constant 0 : index
    %0 = vector.load %arg0[%c0, %c0_0] : memref<16x48xf32, #tpu.memory_space<vmem>>, vector<16x48xf32>
    %1 = arith.truncf %0 : vector<16x48xf32> to vector<16x48xbf16>
    %c0_1 = arith.constant 0 : index
    %c0_2 = arith.constant 0 : index
    %2 = vector.load %arg1[%c0_1, %c0_2] : memref<48x96xbf16, #tpu.memory_space<vmem>>, vector<48x96xbf16>
    %cst = arith.constant dense<0.000000e+00> : vector<16x96xf32>
    %3 = tpu.matmul %1, %2, %cst {dimension_numbers = #tpu.dot_dimension_numbers<[1], [0], [0], [1], [0, 0, 1, 1], [], []>} : vector<16x48xbf16>, vector<48x96xbf16>, vector<16x96xf32> -> vector<16x96xf32>
    %c0_3 = arith.constant 0 : index
    %c0_4 = arith.constant 0 : index
    %4 = vector.load %arg2[%c0_3, %c0_4] : memref<1x96xf32, #tpu.memory_space<vmem>>, vector<1x96xf32>
    %5 = vector.broadcast %4 : vector<1x96xf32> to vector<16x96xf32>
    %6 = arith.addf %3, %5 : vector<16x96xf32>
    %cst_5 = arith.constant 0.000000e+00 : f32
    %7 = vector.broadcast %cst_5 : f32 to vector<16x96xf32>
    %8 = arith.maximumf %6, %7 : vector<16x96xf32>
    %9 = vector.extract_strided_slice %8 {offsets = [0, 0], sizes = [16, 32], strides = [1, 1]} : vector<16x96xf32> to vector<16x32xf32>
    %10 = vector.extract_strided_slice %8 {offsets = [0, 32], sizes = [16, 32], strides = [1, 1]} : vector<16x96xf32> to vector<16x32xf32>
    %11 = vector.extract_strided_slice %8 {offsets = [0, 64], sizes = [16, 32], strides = [1, 1]} : vector<16x96xf32> to vector<16x32xf32>
    %12 = arith.mulf %9, %9 : vector<16x32xf32>
    %cst_6 = arith.constant dense<0.000000e+00> : vector<16xf32>
    %13 = vector.multi_reduction <add>, %12, %cst_6 [1] : vector<16x32xf32> to vector<16xf32>
    %14 = vector.shape_cast %13 : vector<16xf32> to vector<16x1xf32>
    %15 = math.sqrt %14 : vector<16x1xf32>
    %16 = arith.mulf %10, %10 : vector<16x32xf32>
    %cst_7 = arith.constant dense<0.000000e+00> : vector<16xf32>
    %17 = vector.multi_reduction <add>, %16, %cst_7 [1] : vector<16x32xf32> to vector<16xf32>
    %18 = vector.shape_cast %17 : vector<16xf32> to vector<16x1xf32>
    %19 = math.sqrt %18 : vector<16x1xf32>
    %20 = arith.mulf %11, %11 : vector<16x32xf32>
    %cst_8 = arith.constant dense<0.000000e+00> : vector<16xf32>
    %21 = vector.multi_reduction <add>, %20, %cst_8 [1] : vector<16x32xf32> to vector<16xf32>
    %22 = vector.shape_cast %21 : vector<16xf32> to vector<16x1xf32>
    %23 = math.sqrt %22 : vector<16x1xf32>
    %24 = arith.maximumf %15, %19 : vector<16x1xf32>
    %25 = arith.maximumf %24, %23 : vector<16x1xf32>
    %26 = arith.subf %15, %25 : vector<16x1xf32>
    %27 = math.exp %26 : vector<16x1xf32>
    %28 = arith.subf %19, %25 : vector<16x1xf32>
    %29 = math.exp %28 : vector<16x1xf32>
    %30 = arith.subf %23, %25 : vector<16x1xf32>
    %31 = math.exp %30 : vector<16x1xf32>
    %32 = arith.addf %27, %29 : vector<16x1xf32>
    %33 = arith.addf %32, %31 : vector<16x1xf32>
    %34 = tpu.reciprocal %33 {approx = true} : vector<16x1xf32> -> vector<16x1xf32>
    %35 = vector.broadcast %27 : vector<16x1xf32> to vector<16x32xf32>
    %36 = arith.mulf %35, %9 : vector<16x32xf32>
    %cst_9 = arith.constant 9.99999996E-13 : f32
    %37 = vector.broadcast %cst_9 : f32 to vector<16x1xf32>
    %38 = arith.maximumf %15, %37 : vector<16x1xf32>
    %39 = tpu.reciprocal %38 {approx = true} : vector<16x1xf32> -> vector<16x1xf32>
    %40 = vector.broadcast %39 : vector<16x1xf32> to vector<16x32xf32>
    %41 = arith.mulf %36, %40 : vector<16x32xf32>
    %42 = vector.broadcast %29 : vector<16x1xf32> to vector<16x32xf32>
    %43 = arith.mulf %42, %10 : vector<16x32xf32>
    %cst_10 = arith.constant 9.99999996E-13 : f32
    %44 = vector.broadcast %cst_10 : f32 to vector<16x1xf32>
    %45 = arith.maximumf %19, %44 : vector<16x1xf32>
    %46 = tpu.reciprocal %45 {approx = true} : vector<16x1xf32> -> vector<16x1xf32>
    %47 = vector.broadcast %46 : vector<16x1xf32> to vector<16x32xf32>
    %48 = arith.mulf %43, %47 : vector<16x32xf32>
    %49 = arith.addf %41, %48 : vector<16x32xf32>
    %50 = vector.broadcast %31 : vector<16x1xf32> to vector<16x32xf32>
    %51 = arith.mulf %50, %11 : vector<16x32xf32>
    %cst_11 = arith.constant 9.99999996E-13 : f32
    %52 = vector.broadcast %cst_11 : f32 to vector<16x1xf32>
    %53 = arith.maximumf %23, %52 : vector<16x1xf32>
    %54 = tpu.reciprocal %53 {approx = true} : vector<16x1xf32> -> vector<16x1xf32>
    %55 = vector.broadcast %54 : vector<16x1xf32> to vector<16x32xf32>
    %56 = arith.mulf %51, %55 : vector<16x32xf32>
    %57 = arith.addf %49, %56 : vector<16x32xf32>
    %58 = vector.broadcast %34 : vector<16x1xf32> to vector<16x32xf32>
    %59 = arith.mulf %57, %58 : vector<16x32xf32>
    %60 = tpu.iota {dimensions = array<i32: 1>} : vector<16x128xi32>
    %c64_i32 = arith.constant 64 : i32
    %61 = vector.broadcast %c64_i32 : i32 to vector<16x128xi32>
    %62 = arith.cmpi slt, %60, %61 : vector<16x128xi32>
    %63 = arith.truncf %59 : vector<16x32xf32> to vector<16x32xbf16>
    %c0_12 = arith.constant 0 : index
    %c0_13 = arith.constant 0 : index
    %64 = vector.load %arg3[%c0_12, %c0_13] : memref<32x192xbf16, #tpu.memory_space<vmem>>, vector<32x192xbf16>
    %cst_14 = arith.constant dense<0.000000e+00> : vector<16x192xf32>
    %65 = tpu.matmul %63, %64, %cst_14 {dimension_numbers = #tpu.dot_dimension_numbers<[1], [0], [0], [1], [0, 0, 1, 1], [], []>} : vector<16x32xbf16>, vector<32x192xbf16>, vector<16x192xf32> -> vector<16x192xf32>
    %66 = vector.extract_strided_slice %65 {offsets = [0, 0], sizes = [16, 128], strides = [1, 1]} : vector<16x192xf32> to vector<16x128xf32>
    %67 = vector.extract_strided_slice %65 {offsets = [0, 128], sizes = [16, 64], strides = [1, 1]} : vector<16x192xf32> to vector<16x64xf32>
    %cst_15 = arith.constant 5.000000e-01 : f32
    %68 = vector.broadcast %cst_15 : f32 to vector<16x64xf32>
    %69 = arith.mulf %68, %67 : vector<16x64xf32>
    %70 = math.tanh %69 : vector<16x64xf32>
    %cst_16 = arith.constant 1.000000e+00 : f32
    %71 = vector.broadcast %cst_16 : f32 to vector<16x64xf32>
    %72 = arith.addf %70, %71 : vector<16x64xf32>
    %cst_17 = arith.constant 5.000000e-01 : f32
    %73 = vector.broadcast %cst_17 : f32 to vector<16x64xf32>
    %74 = arith.mulf %73, %72 : vector<16x64xf32>
    %75 = arith.mulf %67, %74 : vector<16x64xf32>
    %c0_18 = arith.constant 0 : index
    %c0_19 = arith.constant 0 : index
    %76 = vector.load %arg4[%c0_18, %c0_19] : memref<4x128xf32, #tpu.memory_space<vmem>>, vector<4x128xf32>
    %77 = vector.extract_strided_slice %76 {offsets = [0, 0], sizes = [1, 128], strides = [1, 1]} : vector<4x128xf32> to vector<1x128xf32>
    %78 = vector.extract_strided_slice %76 {offsets = [1, 0], sizes = [1, 128], strides = [1, 1]} : vector<4x128xf32> to vector<1x128xf32>
    %79 = vector.extract_strided_slice %76 {offsets = [2, 0], sizes = [1, 128], strides = [1, 1]} : vector<4x128xf32> to vector<1x128xf32>
    %80 = vector.extract_strided_slice %76 {offsets = [3, 0], sizes = [1, 128], strides = [1, 1]} : vector<4x128xf32> to vector<1x128xf32>
    %81 = vector.broadcast %77 : vector<1x128xf32> to vector<16x128xf32>
    %82 = arith.mulf %66, %81 : vector<16x128xf32>
    %83 = vector.broadcast %78 : vector<1x128xf32> to vector<16x128xf32>
    %84 = arith.addf %82, %83 : vector<16x128xf32>
    %cst_20 = arith.constant 5.000000e-01 : f32
    %85 = vector.broadcast %cst_20 : f32 to vector<16x128xf32>
    %86 = arith.mulf %85, %84 : vector<16x128xf32>
    %87 = math.tanh %86 : vector<16x128xf32>
    %cst_21 = arith.constant 1.000000e+00 : f32
    %88 = vector.broadcast %cst_21 : f32 to vector<16x128xf32>
    %89 = arith.addf %87, %88 : vector<16x128xf32>
    %cst_22 = arith.constant 5.000000e-01 : f32
    %90 = vector.broadcast %cst_22 : f32 to vector<16x128xf32>
    %91 = arith.mulf %90, %89 : vector<16x128xf32>
    %92 = arith.mulf %84, %91 : vector<16x128xf32>
    %93 = arith.truncf %92 : vector<16x128xf32> to vector<16x128xbf16>
    %c0_23 = arith.constant 0 : index
    %c0_24 = arith.constant 0 : index
    %94 = vector.load %arg5[%c0_23, %c0_24] : memref<128x192xbf16, #tpu.memory_space<vmem>>, vector<128x192xbf16>
    %cst_25 = arith.constant dense<0.000000e+00> : vector<16x192xf32>
    %95 = tpu.matmul %93, %94, %cst_25 {dimension_numbers = #tpu.dot_dimension_numbers<[1], [0], [0], [1], [0, 0, 1, 1], [], []>} : vector<16x128xbf16>, vector<128x192xbf16>, vector<16x192xf32> -> vector<16x192xf32>
    %96 = vector.extract_strided_slice %95 {offsets = [0, 0], sizes = [16, 128], strides = [1, 1]} : vector<16x192xf32> to vector<16x128xf32>
    %97 = vector.broadcast %79 : vector<1x128xf32> to vector<16x128xf32>
    %98 = arith.addf %96, %97 : vector<16x128xf32>
    %cst_26 = arith.constant 0.000000e+00 : f32
    %99 = vector.broadcast %cst_26 : f32 to vector<16x128xf32>
    %100 = arith.maximumf %98, %99 : vector<16x128xf32>
    %101 = math.absf %98 : vector<16x128xf32>
    %cst_27 = arith.constant 0.000000e+00 : f32
    %102 = vector.broadcast %cst_27 : f32 to vector<16x128xf32>
    %103 = arith.subf %102, %101 : vector<16x128xf32>
    %104 = math.exp %103 : vector<16x128xf32>
    %105 = math.log1p %104 : vector<16x128xf32>
    %106 = arith.addf %100, %105 : vector<16x128xf32>
    %107 = vector.extract_strided_slice %95 {offsets = [0, 128], sizes = [16, 16], strides = [1, 1]} : vector<16x192xf32> to vector<16x16xf32>
    %108 = vector.extract_strided_slice %95 {offsets = [0, 144], sizes = [16, 16], strides = [1, 1]} : vector<16x192xf32> to vector<16x16xf32>
    %109 = arith.mulf %107, %108 : vector<16x16xf32>
    %cst_28 = arith.constant dense<0.000000e+00> : vector<16xf32>
    %110 = vector.multi_reduction <add>, %109, %cst_28 [1] : vector<16x16xf32> to vector<16xf32>
    %111 = vector.shape_cast %110 : vector<16xf32> to vector<16x1xf32>
    %112 = vector.extract_strided_slice %95 {offsets = [0, 160], sizes = [16, 16], strides = [1, 1]} : vector<16x192xf32> to vector<16x16xf32>
    %113 = vector.extract_strided_slice %95 {offsets = [0, 176], sizes = [16, 16], strides = [1, 1]} : vector<16x192xf32> to vector<16x16xf32>
    %114 = arith.mulf %112, %113 : vector<16x16xf32>
    %cst_29 = arith.constant dense<0.000000e+00> : vector<16xf32>
    %115 = vector.multi_reduction <add>, %114, %cst_29 [1] : vector<16x16xf32> to vector<16xf32>
    %116 = vector.shape_cast %115 : vector<16xf32> to vector<16x1xf32>
    %117 = vector.shape_cast %111 : vector<16x1xf32> to vector<16x1xf32>
    %118 = vector.broadcast %117 : vector<16x1xf32> to vector<16x128xf32>
    %119 = vector.shape_cast %116 : vector<16x1xf32> to vector<16x1xf32>
    %120 = vector.broadcast %119 : vector<16x1xf32> to vector<16x128xf32>
    %121 = arith.select %62, %118, %120 : vector<16x128xi1>, vector<16x128xf32>
    %122 = arith.mulf %106, %92 : vector<16x128xf32>
    %123 = arith.mulf %122, %121 : vector<16x128xf32>
    %124 = vector.broadcast %80 : vector<1x128xf32> to vector<16x128xf32>
    %125 = arith.mulf %124, %92 : vector<16x128xf32>
    %126 = arith.addf %123, %125 : vector<16x128xf32>
    %127 = vector.extract_strided_slice %126 {offsets = [0, 0], sizes = [16, 64], strides = [1, 1]} : vector<16x128xf32> to vector<16x64xf32>
    %128 = vector.extract_strided_slice %126 {offsets = [0, 64], sizes = [16, 64], strides = [1, 1]} : vector<16x128xf32> to vector<16x64xf32>
    %129 = arith.addf %127, %128 : vector<16x64xf32>
    %130 = arith.mulf %129, %75 : vector<16x64xf32>
    %131 = arith.truncf %130 : vector<16x64xf32> to vector<16x64xbf16>
    %c0_30 = arith.constant 0 : index
    %c0_31 = arith.constant 0 : index
    %132 = vector.load %arg6[%c0_30, %c0_31] : memref<64x192xbf16, #tpu.memory_space<vmem>>, vector<64x192xbf16>
    %cst_32 = arith.constant dense<0.000000e+00> : vector<16x192xf32>
    %133 = tpu.matmul %131, %132, %cst_32 {dimension_numbers = #tpu.dot_dimension_numbers<[1], [0], [0], [1], [0, 0, 1, 1], [], []>} : vector<16x64xbf16>, vector<64x192xbf16>, vector<16x192xf32> -> vector<16x192xf32>
    %134 = vector.extract_strided_slice %133 {offsets = [0, 0], sizes = [16, 128], strides = [1, 1]} : vector<16x192xf32> to vector<16x128xf32>
    %135 = vector.extract_strided_slice %133 {offsets = [0, 128], sizes = [16, 64], strides = [1, 1]} : vector<16x192xf32> to vector<16x64xf32>
    %cst_33 = arith.constant 5.000000e-01 : f32
    %136 = vector.broadcast %cst_33 : f32 to vector<16x64xf32>
    %137 = arith.mulf %136, %135 : vector<16x64xf32>
    %138 = math.tanh %137 : vector<16x64xf32>
    %cst_34 = arith.constant 1.000000e+00 : f32
    %139 = vector.broadcast %cst_34 : f32 to vector<16x64xf32>
    %140 = arith.addf %138, %139 : vector<16x64xf32>
    %cst_35 = arith.constant 5.000000e-01 : f32
    %141 = vector.broadcast %cst_35 : f32 to vector<16x64xf32>
    %142 = arith.mulf %141, %140 : vector<16x64xf32>
    %143 = arith.mulf %135, %142 : vector<16x64xf32>
    %c0_36 = arith.constant 0 : index
    %c0_37 = arith.constant 0 : index
    %144 = vector.load %arg7[%c0_36, %c0_37] : memref<4x128xf32, #tpu.memory_space<vmem>>, vector<4x128xf32>
    %145 = vector.extract_strided_slice %144 {offsets = [0, 0], sizes = [1, 128], strides = [1, 1]} : vector<4x128xf32> to vector<1x128xf32>
    %146 = vector.extract_strided_slice %144 {offsets = [1, 0], sizes = [1, 128], strides = [1, 1]} : vector<4x128xf32> to vector<1x128xf32>
    %147 = vector.extract_strided_slice %144 {offsets = [2, 0], sizes = [1, 128], strides = [1, 1]} : vector<4x128xf32> to vector<1x128xf32>
    %148 = vector.extract_strided_slice %144 {offsets = [3, 0], sizes = [1, 128], strides = [1, 1]} : vector<4x128xf32> to vector<1x128xf32>
    %149 = vector.broadcast %145 : vector<1x128xf32> to vector<16x128xf32>
    %150 = arith.mulf %134, %149 : vector<16x128xf32>
    %151 = vector.broadcast %146 : vector<1x128xf32> to vector<16x128xf32>
    %152 = arith.addf %150, %151 : vector<16x128xf32>
    %cst_38 = arith.constant 5.000000e-01 : f32
    %153 = vector.broadcast %cst_38 : f32 to vector<16x128xf32>
    %154 = arith.mulf %153, %152 : vector<16x128xf32>
    %155 = math.tanh %154 : vector<16x128xf32>
    %cst_39 = arith.constant 1.000000e+00 : f32
    %156 = vector.broadcast %cst_39 : f32 to vector<16x128xf32>
    %157 = arith.addf %155, %156 : vector<16x128xf32>
    %cst_40 = arith.constant 5.000000e-01 : f32
    %158 = vector.broadcast %cst_40 : f32 to vector<16x128xf32>
    %159 = arith.mulf %158, %157 : vector<16x128xf32>
    %160 = arith.mulf %152, %159 : vector<16x128xf32>
    %161 = arith.truncf %160 : vector<16x128xf32> to vector<16x128xbf16>
    %c0_41 = arith.constant 0 : index
    %c0_42 = arith.constant 0 : index
    %162 = vector.load %arg8[%c0_41, %c0_42] : memref<128x192xbf16, #tpu.memory_space<vmem>>, vector<128x192xbf16>
    %cst_43 = arith.constant dense<0.000000e+00> : vector<16x192xf32>
    %163 = tpu.matmul %161, %162, %cst_43 {dimension_numbers = #tpu.dot_dimension_numbers<[1], [0], [0], [1], [0, 0, 1, 1], [], []>} : vector<16x128xbf16>, vector<128x192xbf16>, vector<16x192xf32> -> vector<16x192xf32>
    %164 = vector.extract_strided_slice %163 {offsets = [0, 0], sizes = [16, 128], strides = [1, 1]} : vector<16x192xf32> to vector<16x128xf32>
    %165 = vector.broadcast %147 : vector<1x128xf32> to vector<16x128xf32>
    %166 = arith.addf %164, %165 : vector<16x128xf32>
    %cst_44 = arith.constant 0.000000e+00 : f32
    %167 = vector.broadcast %cst_44 : f32 to vector<16x128xf32>
    %168 = arith.maximumf %166, %167 : vector<16x128xf32>
    %169 = math.absf %166 : vector<16x128xf32>
    %cst_45 = arith.constant 0.000000e+00 : f32
    %170 = vector.broadcast %cst_45 : f32 to vector<16x128xf32>
    %171 = arith.subf %170, %169 : vector<16x128xf32>
    %172 = math.exp %171 : vector<16x128xf32>
    %173 = math.log1p %172 : vector<16x128xf32>
    %174 = arith.addf %168, %173 : vector<16x128xf32>
    %175 = vector.extract_strided_slice %163 {offsets = [0, 128], sizes = [16, 16], strides = [1, 1]} : vector<16x192xf32> to vector<16x16xf32>
    %176 = vector.extract_strided_slice %163 {offsets = [0, 144], sizes = [16, 16], strides = [1, 1]} : vector<16x192xf32> to vector<16x16xf32>
    %177 = arith.mulf %175, %176 : vector<16x16xf32>
    %cst_46 = arith.constant dense<0.000000e+00> : vector<16xf32>
    %178 = vector.multi_reduction <add>, %177, %cst_46 [1] : vector<16x16xf32> to vector<16xf32>
    %179 = vector.shape_cast %178 : vector<16xf32> to vector<16x1xf32>
    %180 = vector.extract_strided_slice %163 {offsets = [0, 160], sizes = [16, 16], strides = [1, 1]} : vector<16x192xf32> to vector<16x16xf32>
    %181 = vector.extract_strided_slice %163 {offsets = [0, 176], sizes = [16, 16], strides = [1, 1]} : vector<16x192xf32> to vector<16x16xf32>
    %182 = arith.mulf %180, %181 : vector<16x16xf32>
    %cst_47 = arith.constant dense<0.000000e+00> : vector<16xf32>
    %183 = vector.multi_reduction <add>, %182, %cst_47 [1] : vector<16x16xf32> to vector<16xf32>
    %184 = vector.shape_cast %183 : vector<16xf32> to vector<16x1xf32>
    %185 = vector.shape_cast %179 : vector<16x1xf32> to vector<16x1xf32>
    %186 = vector.broadcast %185 : vector<16x1xf32> to vector<16x128xf32>
    %187 = vector.shape_cast %184 : vector<16x1xf32> to vector<16x1xf32>
    %188 = vector.broadcast %187 : vector<16x1xf32> to vector<16x128xf32>
    %189 = arith.select %62, %186, %188 : vector<16x128xi1>, vector<16x128xf32>
    %190 = arith.mulf %174, %160 : vector<16x128xf32>
    %191 = arith.mulf %190, %189 : vector<16x128xf32>
    %192 = vector.broadcast %148 : vector<1x128xf32> to vector<16x128xf32>
    %193 = arith.mulf %192, %160 : vector<16x128xf32>
    %194 = arith.addf %191, %193 : vector<16x128xf32>
    %195 = vector.extract_strided_slice %194 {offsets = [0, 0], sizes = [16, 64], strides = [1, 1]} : vector<16x128xf32> to vector<16x64xf32>
    %196 = vector.extract_strided_slice %194 {offsets = [0, 64], sizes = [16, 64], strides = [1, 1]} : vector<16x128xf32> to vector<16x64xf32>
    %197 = arith.addf %195, %196 : vector<16x64xf32>
    %198 = arith.mulf %197, %143 : vector<16x64xf32>
    %199 = arith.truncf %198 : vector<16x64xf32> to vector<16x64xbf16>
    %c0_48 = arith.constant 0 : index
    %c0_49 = arith.constant 0 : index
    %200 = vector.load %arg9[%c0_48, %c0_49] : memref<64x16xbf16, #tpu.memory_space<vmem>>, vector<64x16xbf16>
    %cst_50 = arith.constant dense<0.000000e+00> : vector<16x16xf32>
    %201 = tpu.matmul %199, %200, %cst_50 {dimension_numbers = #tpu.dot_dimension_numbers<[1], [0], [0], [1], [0, 0, 1, 1], [], []>} : vector<16x64xbf16>, vector<64x16xbf16>, vector<16x16xf32> -> vector<16x16xf32>
    %c0_51 = arith.constant 0 : index
    %c0_52 = arith.constant 0 : index
    %202 = vector.load %arg10[%c0_51, %c0_52] : memref<1x16xf32, #tpu.memory_space<vmem>>, vector<1x16xf32>
    %203 = vector.broadcast %202 : vector<1x16xf32> to vector<16x16xf32>
    %204 = arith.addf %201, %203 : vector<16x16xf32>
    %cst_53 = arith.constant 0.000000e+00 : f32
    %205 = vector.broadcast %cst_53 : f32 to vector<16x16xf32>
    %206 = arith.maximumf %204, %205 : vector<16x16xf32>
    %207 = arith.truncf %206 : vector<16x16xf32> to vector<16x16xbf16>
    %c0_54 = arith.constant 0 : index
    %c0_55 = arith.constant 0 : index
    %208 = vector.load %arg11[%c0_54, %c0_55] : memref<16x128xbf16, #tpu.memory_space<vmem>>, vector<16x128xbf16>
    %cst_56 = arith.constant dense<0.000000e+00> : vector<16x128xf32>
    %209 = tpu.matmul %207, %208, %cst_56 {dimension_numbers = #tpu.dot_dimension_numbers<[1], [0], [0], [1], [0, 0, 1, 1], [], []>} : vector<16x16xbf16>, vector<16x128xbf16>, vector<16x128xf32> -> vector<16x128xf32>
    %c0_57 = arith.constant 0 : index
    %c0_58 = arith.constant 0 : index
    %210 = vector.load %arg12[%c0_57, %c0_58] : memref<1x128xf32, #tpu.memory_space<vmem>>, vector<1x128xf32>
    %211 = vector.broadcast %210 : vector<1x128xf32> to vector<16x128xf32>
    %212 = arith.addf %209, %211 : vector<16x128xf32>
    %213 = math.tanh %212 : vector<16x128xf32>
    %214 = tpu.iota {dimensions = array<i32: 1>} : vector<16x128xi32>
    %c4_i32 = arith.constant 4 : i32
    %215 = vector.broadcast %c4_i32 : i32 to vector<16x128xi32>
    %216 = arith.cmpi slt, %214, %215 : vector<16x128xi32>
    %cst_59 = arith.constant -1.000000e+30 : f32
    %217 = vector.broadcast %cst_59 : f32 to vector<16x128xf32>
    %218 = arith.select %216, %213, %217 : vector<16x128xi1>, vector<16x128xf32>
    %cst_60 = arith.constant dense<0xFF800000> : vector<16xf32>
    %219 = vector.multi_reduction <maximumf>, %218, %cst_60 [1] : vector<16x128xf32> to vector<16xf32>
    %220 = vector.shape_cast %219 : vector<16xf32> to vector<16x1xf32>
    %221 = vector.broadcast %220 : vector<16x1xf32> to vector<16x128xf32>
    %222 = arith.subf %218, %221 : vector<16x128xf32>
    %223 = math.exp %222 : vector<16x128xf32>
    %cst_61 = arith.constant dense<0.000000e+00> : vector<16xf32>
    %224 = vector.multi_reduction <add>, %223, %cst_61 [1] : vector<16x128xf32> to vector<16xf32>
    %225 = vector.shape_cast %224 : vector<16xf32> to vector<16x1xf32>
    %226 = math.log %225 : vector<16x1xf32>
    %227 = arith.addf %226, %220 : vector<16x1xf32>
    %228 = vector.broadcast %227 : vector<16x1xf32> to vector<16x128xf32>
    %229 = arith.subf %218, %228 : vector<16x128xf32>
    %c0_62 = arith.constant 0 : index
    %c0_63 = arith.constant 0 : index
    %230 = vector.load %arg13[%c0_62, %c0_63] : memref<16x128xf32, #tpu.memory_space<vmem>>, vector<16x128xf32>
    tpu.vector_store %arg13[%c0_62, %c0_63], %229 {strides = array<i32>} : memref<16x128xf32, #tpu.memory_space<vmem>>, vector<16x128xf32>,
    return
  }
}

</mosaic_0001>

<bundles_post_ra>
// kernel: baseline_mamba_forward.1
= control target key start
LH: loop header
LB: loop body
LE: loop exit
PB: predicated region body
PF: predicated region fallthrough
CT: control target
= control target key end

     0   :  { %v1420_v0 = vmov 0.0   ;;  %vm1421_vm0 = vmmov 0   ;;  %vm79_vm1 = vcmask 392192   ;;  %vm128_vm2 = vcmask 261120   ;;  %s1843_s1 = inlined_call_operand.vmem [shape: bf16[48,96], index: 1, kind: input, shape index: {}]   ;;  %s1844_s0 = inlined_call_operand.vmem [shape: f32[16,48], index: 0, kind: input, shape index: {}]   ;;  %s1845_s2 = inlined_call_operand.vmem [shape: f32[1,96], index: 2, kind: input, shape index: {}]   ;;  %s1846_s3 = inlined_call_operand.vmem [shape: bf16[32,192], index: 3, kind: input, shape index: {}]   ;;  %s1847_s5 = inlined_call_operand.vmem [shape: bf16[128,192], index: 5, kind: input, shape index: {}]   ;;  %s1848_s4 = inlined_call_operand.vmem [shape: f32[4,128], index: 4, kind: input, shape index: {}]   ;;  %s1849_s6 = inlined_call_operand.vmem [shape: bf16[64,192], index: 6, kind: input, shape index: {}]   ;;  %s1850_s8 = inlined_call_operand.vmem [shape: bf16[128,192], index: 8, kind: input, shape index: {}]   ;;  %s1851_s7 = inlined_call_operand.vmem [shape: f32[4,128], index: 7, kind: input, shape index: {}]   ;;  %s1852_s9 = inlined_call_operand.vmem [shape: bf16[64,16], index: 9, kind: input, shape index: {}]   ;;  %s1853_s11 = inlined_call_operand.vmem [shape: bf16[16,128], index: 11, kind: input, shape index: {}]   ;;  %s1854_s10 = inlined_call_operand.vmem [shape: f32[1,16], index: 10, kind: input, shape index: {}]   ;;  %s1855_s12 = inlined_call_operand.vmem [shape: f32[1,128], index: 12, kind: input, shape index: {}]   ;;  %s1856_s13 = inlined_call_operand.vmem [shape: f32[16,128], index: 13, kind: output, shape index: {}]  }
   0x1   :  { %1228 = vmatprep.subr.bf16.mxu0 %v1420_v0  ;;  %v1262_v1 = vld [vmem:[%s1843_s1 + $0x10] sm:$0xff]   ;;  %1234 = vmatprep.mubr.msk.bf16.mxu0 %vm1421_vm0, %v1420_v0  ;;  %v1263_v2 = vld [vmem:[%s1843_s1 + $0x8] sm:$0xff]   ;;  %v1264_v3 = vld [vmem:[%s1843_s1] sm:$0xff]   ;;  %s1423_s1 = smov 96   ;;  %vm570_vm15 = vcmask 130048  }
   0x2   :  { %1229 = vmatpush3.bf16.msra.mxu0 %v1262_v1  ;;  %v45_v4 = vld [vmem:[%s1844_s0] sm:$0xff]  ;;  %v46_v5 = vld [vmem:[%s1844_s0 + $0x8] sm:$0xff]  ;;  %s1422_s0 = smov 64  }
   0x3   :  { %1230 = vmatprep.subr.bf16.mxu0 %v1420_v0  ;;  %v47_v6 = vpack.c.bf16 %v46_v5, %v45_v4  ;;  %v1157_v7 = vld [vmem:[%s1845_s2] ss:$0 sm:$0xff] }
   0x6   :  { %1231 = vmatpush3.bf16.msra.mxu0 %v1263_v2 }
   0x7   :  { %1232 = vmatprep.subr.bf16.mxu0 %v1420_v0 }
   0xa   :  { %1233 = vmatpush3.bf16.msra.mxu0 %v1264_v3 }
   0xd   :  { %1235 = vmatmul.mubr.msk.bf16.vlgmr.msra.gmra.mxu0 %vm79_vm1, %v47_v6 }
  0xcd   :  { %v117_v8 = vpop.f32.mrf.mxu0 }
  0xce   :  { %v118_v9 = vadd.f32 %v1157_v7, %v117_v8 }
  0xcf   :  { %v1236_v10 = vpop.f32.mrf.mxu0 }
  0xd0   :  { %v1519_v11 = vmax.f32 %v118_v9, 0.0 }
  0xd1   :  { %v120_v12 = vpop.f32.mrf.mxu0 }
  0xd2   :  { %v121_v13 = vadd.f32 %v1157_v7, %v120_v12  ;;  %v126_v14 = vmul.f32 %v1519_v11, %v1519_v11 }
  0xd3   :  { %v1237_v15 = vpop.f32.mrf.mxu0 }
  0xd4   :  { %v1523_v16 = vmax.f32 %v121_v13, 0.0  ;;  %177 = vrot.lane.b32.xlu1 %v126_v14, %s1422_s0  ;;  %151 = vrot.lane.b32.xlu0 %v126_v14, %s1423_s1  ;;  %v129_v18 = vsel %vm128_vm2, %v126_v14, 0.0 }
  0xd6   :  { %v127_v17 = vmul.f32 %v1523_v16, %v1523_v16 }
  0xd8   :  { %179 = vrot.lane.b32.xlu1 %v127_v17, %s1422_s0  ;;  %153 = vrot.lane.b32.xlu0 %v127_v17, %s1423_s1  ;;  %v132_v19 = vsel %vm128_vm2, %v127_v17, 0.0 }
  0xf7   :  { %130 = vadd.xlane.f32.xlu0 %v129_v18 }
  0xfc   :  { %133 = vadd.xlane.f32.xlu1 %v132_v19 }
 0x146   :  { %v178_v20 = vpop.permute.xlu1 %177  ;;  %v152_v21 = vpop.permute.xlu0 %151 }
 0x147   :  { %v157_v22 = vsel %vm128_vm2, %v152_v21, 0.0  ;;  %v183_v23 = vsel %vm128_vm2, %v178_v20, 0.0 }
 0x148   :  { %158 = vadd.xlane.f32.xlu0 %v157_v22  ;;  %184 = vadd.xlane.f32.xlu1 %v183_v23  ;;  %v1265_v23 = vld [vmem:[%s1846_s3 + $0x14] ss:$8 sps:$4 sm:$0xff]  }
 0x149   :  { %320 = vmatprep.subr.bf16.mxu1 %v1265_v23  ;;  %v1292_v23 = vld [vmem:[%s1847_s5] ss:$8 sps:$4 sm:$0xff]  }
 0x14a   :  { %v154_v24 = vpop.permute.xlu0 %153  ;;  %v180_v26 = vpop.permute.xlu1 %179 }
 0x14b   :  { %v160_v25 = vsel %vm128_vm2, %v154_v24, 0.0  ;;  %v186_v27 = vsel %vm128_vm2, %v180_v26, 0.0 }
 0x14c   :  { %161 = vadd.xlane.f32.xlu0 %v160_v25  ;;  %v1267_v25 = vld [vmem:[%s1846_s3 + $0x10] ss:$8 sps:$4 sm:$0xff]  }
 0x14d   :  { %321 = vmatpush1.bf16.msra.mxu1 %v1267_v25 }
 0x150   :  { %187 = vadd.xlane.f32.xlu0 %v186_v27 }
 0x180   :  { %v131_v28 = vpop.xlane.xlu0 %130 }
 0x181   :  { %1336 = vrsqrt.f32 %v131_v28  ;;  %vm137_vm3 = vcmp.eq.f32.partialorder %v131_v28, inf  ;;  %vm139_vm4 = vcmp.eq.f32.partialorder %v131_v28, 0.0  ;;  %v140_v41 = vand.u32 2147483648, %v131_v28 }
 0x185   :  { %v134_v29 = vpop.xlane.xlu1 %133 }
 0x186   :  { %1338 = vrsqrt.f32 %v134_v29  ;;  %vm144_vm9 = vcmp.eq.f32.partialorder %v134_v29, inf  ;;  %v147_v59 = vand.u32 2147483648, %v134_v29  ;;  %vm146_vm12 = vcmp.eq.f32.partialorder %v134_v29, 0.0 }
 0x18e   :  { %v1337_v33 = vpop.eup %1336 }
 0x18f   :  { %v136_v35 = vmul.f32 %v1337_v33, %v131_v28 }
 0x191   :  { %v138_v39 = vsel %vm137_vm3, %v131_v28, %v136_v35 }
 0x192   :  { %v1537_v47 = vsel %vm139_vm4, %v140_v41, %v138_v39  ;;  %vm666_vm4 = vcmask 523264  }
 0x193   :  { %v1339_v36 = vpop.eup %1338 }
 0x194   :  { %v143_v44 = vmul.f32 %v1339_v36, %v134_v29 }
 0x196   :  { %v145_v54 = vsel %vm144_vm9, %v134_v29, %v143_v44 }
 0x197   :  { %v1540_v63 = vsel %vm146_vm12, %v147_v59, %v145_v54 }
 0x1d1   :  { %v159_v30 = vpop.xlane.xlu0 %158  ;;  %v185_v31 = vpop.xlane.xlu1 %184 }
 0x1d2   :  { %1340 = vrsqrt.f32 %v159_v30  ;;  %vm165_vm5 = vcmp.eq.f32.partialorder %v159_v30, inf  ;;  %v168_v42 = vand.u32 2147483648, %v159_v30  ;;  %vm167_vm6 = vcmp.eq.f32.partialorder %v159_v30, 0.0 }
 0x1d3   :  { %1342 = vrsqrt.f32 %v185_v31  ;;  %vm191_vm7 = vcmp.eq.f32.partialorder %v185_v31, inf  ;;  %v194_v50 = vand.u32 2147483648, %v185_v31  ;;  %vm193_vm8 = vcmp.eq.f32.partialorder %v185_v31, 0.0 }
 0x1d5   :  { %v162_v32 = vpop.xlane.xlu0 %161 }
 0x1d6   :  { %1344 = vrsqrt.f32 %v162_v32  ;;  %vm172_vm10 = vcmp.eq.f32.partialorder %v162_v32, inf  ;;  %v175_v57 = vand.u32 2147483648, %v162_v32  ;;  %vm174_vm11 = vcmp.eq.f32.partialorder %v162_v32, 0.0 }
 0x1d9   :  { %v188_v34 = vpop.xlane.xlu0 %187 }
 0x1da   :  { %1346 = vrsqrt.f32 %v188_v34  ;;  %vm198_vm13 = vcmp.eq.f32.partialorder %v188_v34, inf  ;;  %vm200_vm14 = vcmp.eq.f32.partialorder %v188_v34, 0.0  ;;  %v201_v4 = vand.u32 2147483648, %v188_v34 }
 0x1df   :  { %v1341_v37 = vpop.eup %1340 }
 0x1e0   :  { %v1343_v38 = vpop.eup %1342  ;;  %v164_v40 = vmul.f32 %v1341_v37, %v159_v30 }
 0x1e1   :  { %v190_v43 = vmul.f32 %v1343_v38, %v185_v31  ;;  %v1424_v38 = vmov 0  }
 0x1e2   :  { %v166_v45 = vsel %vm165_vm5, %v159_v30, %v164_v40  ;;  %340 = vmatprep.mubr.bf16.mxu1 %v1424_v38  ;;  %702 = vmatprep.mubr.bf16.mxu0 %v1424_v38 }
 0x1e3   :  { %v1345_v46 = vpop.eup %1344  ;;  %v169_v48 = vsel %vm167_vm6, %v168_v42, %v166_v45  ;;  %v192_v49 = vsel %vm191_vm7, %v185_v31, %v190_v43  ;;  %v1268_v31 = vld [vmem:[%s1846_s3 + $0x4] ss:$8 sps:$4 sm:$0xff]  }
 0x1e4   :  { %v203_v51 = vmax.f32 %v1537_v47, %v169_v48  ;;  %v171_v52 = vmul.f32 %v1345_v46, %v162_v32  ;;  %v195_v53 = vsel %vm193_vm8, %v194_v50, %v192_v49  ;;  %v241_v6 = vmax.f32 %v169_v48, 1e-12  ;;  %322 = vmatprep.subr.bf16.mxu1 %v1268_v31 }
 0x1e5   :  { %v259_v13 = vmax.f32 %v195_v53, 1e-12 }
 0x1e6   :  { %v205_v55 = vmax.f32 %v203_v51, %v195_v53  ;;  %v173_v56 = vsel %vm172_vm10, %v162_v32, %v171_v52  ;;  %v233_v51 = vmax.f32 %v1537_v47, 1e-12  ;;  %v234_v52 = vmax.f32 %v1540_v63, 1e-12 }
 0x1e7   :  { %v1347_v58 = vpop.eup %1346  ;;  %v176_v62 = vsel %vm174_vm11, %v175_v57, %v173_v56 }
 0x1e8   :  { %v213_v60 = vsub.f32 %v169_v48, %v205_v55  ;;  %v219_v61 = vsub.f32 %v195_v53, %v205_v55  ;;  %v197_v1 = vmul.f32 %v1347_v58, %v188_v34  ;;  %v207_v2 = vsub.f32 %v1537_v47, %v205_v55 }
 0x1e9   :  { %v204_v7 = vmax.f32 %v1540_v63, %v176_v62  ;;  %v242_v21 = vmax.f32 %v176_v62, 1e-12 }
 0x1ea   :  { %v221_v3 = vmul.f32 1.442695, %v219_v61  ;;  %v215_v5 = vmul.f32 1.442695, %v213_v60  ;;  %v199_v8 = vsel %vm198_vm13, %v188_v34, %v197_v1  ;;  %v209_v9 = vmul.f32 1.442695, %v207_v2 }
 0x1eb   :  { %v202_v10 = vsel %vm200_vm14, %v201_v4, %v199_v8  ;;  %v1270_v34 = vld [vmem:[%s1846_s3] ss:$8 sps:$4 sm:$0xff]   ;;  %v1276_v8 = vld [vmem:[%s1847_s5 + $0x64] ss:$8 sps:$4 sm:$0xff]  }
 0x1ec   :  { %1348 = vpow2.f32 %v221_v3  ;;  %v206_v12 = vmax.f32 %v204_v7, %v202_v10  ;;  %v260_v22 = vmax.f32 %v202_v10, 1e-12  ;;  %323 = vmatpush1.bf16.msra.mxu1 %v1270_v34  ;;  %v1271_v7 = vld [vmem:[%s1847_s5 + $0x70] ss:$8 sps:$4 sm:$0xff]  }
 0x1ed   :  { %1350 = vpow2.f32 %v215_v5 }
 0x1ee   :  { %1352 = vpow2.f32 %v209_v9  ;;  %v214_v14 = vsub.f32 %v176_v62, %v206_v12  ;;  %v220_v15 = vsub.f32 %v202_v10, %v206_v12  ;;  %v208_v17 = vsub.f32 %v1540_v63, %v206_v12  ;;  %v1274_v9 = vld [vmem:[%s1847_s5 + $0x60] ss:$8 sps:$4 sm:$0xff]   ;;  %v1279_v10 = vld [vmem:[%s1847_s5 + $0x54] ss:$8 sps:$4 sm:$0xff]   ;;  %v1277_v12 = vld [vmem:[%s1847_s5 + $0x50] ss:$8 sps:$4 sm:$0xff]  }
 0x1ef   :  { %1354 = vrcp.f32 %v241_v6 }
 0x1f0   :  { %v223_v18 = vmul.f32 1.442695, %v220_v15  ;;  %v217_v19 = vmul.f32 1.442695, %v214_v14  ;;  %v211_v20 = vmul.f32 1.442695, %v208_v17  ;;  %1356 = vrcp.f32 %v259_v13 }
 0x1f1   :  { %v1282_v13 = vld [vmem:[%s1847_s5 + $0x44] ss:$8 sps:$4 sm:$0xff]   ;;  %v1280_v14 = vld [vmem:[%s1847_s5 + $0x40] ss:$8 sps:$4 sm:$0xff]   ;;  %v1285_v15 = vld [vmem:[%s1847_s5 + $0x34] ss:$8 sps:$4 sm:$0xff]  }
 0x1f2   :  { %1358 = vpow2.f32 %v223_v18  ;;  %v1283_v17 = vld [vmem:[%s1847_s5 + $0x30] ss:$8 sps:$4 sm:$0xff]   ;;  %v1288_v18 = vld [vmem:[%s1847_s5 + $0x24] ss:$8 sps:$4 sm:$0xff]  }
 0x1f3   :  { %1360 = vpow2.f32 %v217_v19  ;;  %v1286_v19 = vld [vmem:[%s1847_s5 + $0x20] ss:$8 sps:$4 sm:$0xff]  }
 0x1f4   :  { %1362 = vpow2.f32 %v211_v20  ;;  %v1291_v20 = vld [vmem:[%s1847_s5 + $0x14] ss:$8 sps:$4 sm:$0xff]  }
 0x1f5   :  { %1364 = vrcp.f32 %v242_v21  ;;  %v1289_v21 = vld [vmem:[%s1847_s5 + $0x10] ss:$8 sps:$4 sm:$0xff]  }
 0x1f6   :  { %1366 = vrcp.f32 %v260_v22  ;;  %v1294_v22 = vld [vmem:[%s1847_s5 + $0x4] ss:$8 sps:$4 sm:$0xff]  }
 0x1f7   :  { %1368 = vrcp.f32 %v233_v51 }
 0x1f8   :  { %1370 = vrcp.f32 %v234_v52 }
 0x1f9   :  { %v1349_v24 = vpop.eup %1348 }
 0x1fa   :  { %v1351_v26 = vpop.eup %1350  ;;  %v257_v33 = vmul.f32 %v1349_v24, %v1519_v11 }
 0x1fb   :  { %v1353_v27 = vpop.eup %1352  ;;  %v239_v28 = vmul.f32 %v1351_v26, %v1519_v11 }
 0x1fc   :  { %v1355_v29 = vpop.eup %1354  ;;  %v225_v30 = vadd.f32 %v1353_v27, %v1351_v26  ;;  %v231_v53 = vmul.f32 %v1353_v27, %v1519_v11  ;;  %v1629_v27 = vld [vmem:[%s1848_s4] sm:$0xf]  ;;  %s1425_s4 = smov 112  }
 0x1fd   :  { %v245_v32 = vmul.f32 %v1355_v29, %v239_v28  ;;  %v1357_v36 = vpop.eup %1356 }
 0x1fe   :  { %v227_v35 = vadd.f32 %v1349_v24, %v225_v30  ;;  %v263_v40 = vmul.f32 %v1357_v36, %v257_v33  ;;  %v277_v24 = vlaneseq }
 0x1ff   :  { %249 = vrot.lane.b32.xlu1 %v245_v32, %s1423_s1  ;;  %v1359_v37 = vpop.eup %1358 }
 0x200   :  { %v1361_v39 = vpop.eup %1360  ;;  %v258_v41 = vmul.f32 %v1359_v37, %v1523_v16  ;;  %1372 = vrcp.f32 %v227_v35  ;;  %v1623_v25 = vshrl.u32 %v277_v24, 7 }
 0x201   :  { %v1363_v42 = vpop.eup %1362  ;;  %v240_v43 = vmul.f32 %v1361_v39, %v1523_v16 }
 0x202   :  { %v1365_v44 = vpop.eup %1364  ;;  %v226_v45 = vadd.f32 %v1363_v42, %v1361_v39  ;;  %v232_v57 = vmul.f32 %v1363_v42, %v1523_v16  ;;  %v1273_v16 = vld [vmem:[%s1847_s5 + $0x74] ss:$8 sps:$4 sm:$0xff]   ;;  %v364_v26 = vsub.s32 0, %v1623_v25  ;;  %v370_v28 = vsub.s32 1, %v1623_v25 }
 0x203   :  { %267 = vrot.lane.b32.xlu1 %v263_v40, %s1422_s0  ;;  %v1367_v46 = vpop.eup %1366  ;;  %v246_v48 = vmul.f32 %v1365_v44, %v240_v43  ;;  %481 = vmatprep.subr.bf16.mxu1 %v1273_v16 }
 0x204   :  { %v264_v49 = vmul.f32 %v1367_v46, %v258_v41  ;;  %v228_v50 = vadd.f32 %v1359_v37, %v226_v45  ;;  %v1369_v54 = vpop.eup %1368  ;;  %v365_v29 = vrot.slane %v1629_v27, %v364_v26  ;;  %v371_v30 = vrot.slane %v1629_v27, %v370_v28 }
 0x205   :  { %251 = vrot.lane.b32.xlu0 %v246_v48, %s1423_s1  ;;  %v237_v56 = vmul.f32 %v1369_v54, %v231_v53  ;;  %v1371_v60 = vpop.eup %1370 }
 0x206   :  { %1374 = vrcp.f32 %v228_v50  ;;  %v238_v1 = vmul.f32 %v1371_v60, %v232_v57 }
 0x207   :  { %269 = vrot.lane.b32.xlu1 %v264_v49, %s1422_s0 }
 0x20d   :  { %v1373_v62 = vpop.eup %1372 }
 0x213   :  { %v1375_v5 = vpop.eup %1374 }
 0x271   :  { %v250_v55 = vpop.permute.xlu1 %249 }
 0x272   :  { %v255_v58 = vadd.f32 %v250_v55, %v237_v56 }
 0x275   :  { %v268_v59 = vpop.permute.xlu1 %267 }
 0x276   :  { %v273_v61 = vadd.f32 %v268_v59, %v255_v58 }
 0x277   :  { %v252_v2 = vpop.permute.xlu0 %251 }
 0x278   :  { %v275_v47 = vmul.f32 %v1373_v62, %v273_v61  ;;  %v256_v3 = vadd.f32 %v252_v2, %v238_v1 }
 0x279   :  { %v270_v63 = vpop.permute.xlu1 %269 }
 0x27a   :  { %v274_v4 = vadd.f32 %v270_v63, %v256_v3  ;;  %v1295_v3 = vld [vmem:[%s1849_s6 + $0x30] ss:$8 sps:$4 sm:$0xff]   ;;  %v1297_v63 = vld [vmem:[%s1849_s6 + $0x34] ss:$8 sps:$4 sm:$0xff]  }
 0x27b   :  { %678 = vmatprep.subr.bf16.mxu0 %v1297_v63 }
 0x27c   :  { %v276_v6 = vmul.f32 %v1375_v5, %v274_v4  ;;  %v1300_v4 = vld [vmem:[%s1849_s6 + $0x24] ss:$8 sps:$4 sm:$0xff]   ;;  %679 = vmatpush1.bf16.msra.mxu0 %v1295_v3  ;;  %v1298_v5 = vld [vmem:[%s1849_s6 + $0x20] ss:$8 sps:$4 sm:$0xff]  }
 0x27d   :  { %680 = vmatprep.subr.bf16.mxu0 %v1300_v4 }
 0x27e   :  { %v280_v11 = vpack.c.bf16 %v276_v6, %v275_v47  ;;  %v526_v6 = vsub.s32 2, %v1623_v25 }
 0x280   :  { %1166 = vmatmul.mubr.msk.bf16.vlgmr.msra.gmra.mxu1 %vm128_vm2, %v280_v11  ;;  %681 = vmatpush1.bf16.msra.mxu0 %v1298_v5  ;;  %v527_v11 = vrot.slane %v1629_v27, %v526_v6 }
 0x281   :  { %513 = vmatprep.mubr.bf16.mxu1 %v1424_v38  ;;  %482 = vmatpush1.bf16.msra.mxu1 %v1271_v7 }
 0x282   :  { %483 = vmatprep.subr.bf16.mxu1 %v1276_v8 }
 0x285   :  { %484 = vmatpush1.bf16.msra.mxu1 %v1274_v9 }
 0x286   :  { %485 = vmatprep.subr.bf16.mxu1 %v1279_v10 }
 0x289   :  { %486 = vmatpush1.bf16.msra.mxu1 %v1277_v12 }
 0x28a   :  { %487 = vmatprep.subr.bf16.mxu1 %v1282_v13 }
 0x28d   :  { %488 = vmatpush1.bf16.msra.mxu1 %v1280_v14 }
 0x28e   :  { %489 = vmatprep.subr.bf16.mxu1 %v1285_v15 }
 0x291   :  { %490 = vmatpush1.bf16.msra.mxu1 %v1283_v17 }
 0x292   :  { %491 = vmatprep.subr.bf16.mxu1 %v1288_v18 }
 0x295   :  { %492 = vmatpush1.bf16.msra.mxu1 %v1286_v19 }
 0x296   :  { %493 = vmatprep.subr.bf16.mxu1 %v1291_v20 }
 0x299   :  { %494 = vmatpush1.bf16.msra.mxu1 %v1289_v21 }
 0x29a   :  { %495 = vmatprep.subr.bf16.mxu1 %v1294_v22 }
 0x29d   :  { %496 = vmatpush1.bf16.msra.mxu1 %v1292_v23 }
 0x29e   :  { %1238 = vmatprep.subr.bf16.mxu1 %v1420_v0 }
 0x340   :  { %v342_v31 = vpop.f32.mrf.mxu1 }
 0x341   :  { %v366_v32 = vmul.f32 %v365_v29, %v342_v31 }
 0x342   :  { %v1638_v33 = vpop.f32.mrf.mxu1 }
 0x343   :  { %v372_v34 = vadd.f32 %v371_v30, %v366_v32  ;;  %v351_v4 = vmul.f32 0.5, %v1638_v33 }
 0x344   :  { %v346_v35 = vpop.f32.mrf.mxu1 }
 0x345   :  { %v374_v36 = vmul.f32 0.5, %v372_v34  ;;  %v367_v37 = vmul.f32 %v365_v29, %v346_v35 }
 0x346   :  { %v1648_v51 = vpop.f32.mrf.mxu1 }
 0x347   :  { %1376 = vtanh.f32 %v374_v36  ;;  %v373_v39 = vadd.f32 %v371_v30, %v367_v37 }
 0x349   :  { %v375_v40 = vmul.f32 0.5, %v373_v39 }
 0x34b   :  { %1378 = vtanh.f32 %v375_v40  ;;  %v1675_v40 = vand.u32 127, %v277_v24 }
 0x34d   :  { %vm279_vm3 = vcmp.lt.s32.totalorder %v1675_v40, 64 }
 0x354   :  { %v1377_v41 = vpop.eup %1376 }
 0x355   :  { %v378_v42 = vadd.f32 1.0, %v1377_v41  ;;  %v599_v41 = vsub.s32 3, %v1623_v25 }
 0x357   :  { %v380_v44 = vmul.f32 0.5, %v378_v42  ;;  %v1303_v42 = vld [vmem:[%s1849_s6 + $0x14] ss:$8 sps:$4 sm:$0xff]   ;;  %v600_v24 = vrot.slane %v1629_v27, %v599_v41 }
 0x358   :  { %v1379_v43 = vpop.eup %1378  ;;  %682 = vmatprep.subr.bf16.mxu0 %v1303_v42  ;;  %v1761_v42 = vld [vmem:[%s1851_s7] sm:$0xf] }
 0x359   :  { %v379_v45 = vadd.f32 1.0, %v1379_v43  ;;  %v1640_v48 = vmul.f32 %v380_v44, %v372_v34  ;;  %v1301_v44 = vld [vmem:[%s1849_s6 + $0x10] ss:$8 sps:$4 sm:$0xff]  }
 0x35a   :  { %683 = vmatpush1.bf16.msra.mxu0 %v1301_v44  ;;  %v733_v44 = vrot.slane %v1761_v42, %v370_v28 }
 0x35b   :  { %v381_v46 = vmul.f32 0.5, %v379_v45  ;;  %v601_v27 = vmul.f32 %v600_v24, %v1640_v48 }
 0x35d   :  { %v1642_v49 = vmul.f32 %v381_v46, %v373_v39 }
 0x35f   :  { %v384_v50 = vpack.c.bf16 %v1642_v49, %v1640_v48  ;;  %v602_v3 = vmul.f32 %v600_v24, %v1642_v49 }
 0x361   :  { %514 = vmatmul.mubr.bf16.vlgmr.msra.gmra.mxu1 %v384_v50 }
 0x362   :  { %1246 = vmatprep.mubr.msk.bf16.mxu1 %vm1421_vm0, %v1420_v0 }
 0x421   :  { %v515_v52 = vpop.f32.mrf.mxu1 }
 0x422   :  { %v528_v16 = vadd.f32 %v527_v11, %v515_v52 }
 0x423   :  { %v517_v53 = vpop.f32.mrf.mxu1 }
 0x424   :  { %562 = vrot.lane.b32.xlu0 %v517_v53, %s1425_s4  ;;  %v532_v7 = vand.u32 2147483647, %v528_v16  ;;  %v530_v39 = vmax.f32 %v528_v16, 0.0 }
 0x425   :  { %v519_v54 = vpop.f32.mrf.mxu1 }
 0x426   :  { %v529_v8 = vadd.f32 %v527_v11, %v519_v54  ;;  %v534_v9 = vsub.f32 0.0, %v532_v7  ;;  %v1304_v54 = vld [vmem:[%s1849_s6] ss:$8 sps:$4 sm:$0xff]  }
 0x427   :  { %v521_v55 = vpop.f32.mrf.mxu1 }
 0x428   :  { %564 = vrot.lane.b32.xlu1 %v521_v55, %s1425_s4  ;;  %v533_v10 = vand.u32 2147483647, %v529_v8  ;;  %v536_v12 = vmul.f32 1.442695, %v534_v9  ;;  %v531_v52 = vmax.f32 %v529_v8, 0.0 }
 0x42a   :  { %v535_v13 = vsub.f32 0.0, %v533_v10  ;;  %1380 = vpow2.f32 %v536_v12 }
 0x42c   :  { %v538_v14 = vmul.f32 1.442695, %v535_v13 }
 0x42e   :  { %1382 = vpow2.f32 %v538_v14 }
 0x437   :  { %v1381_v15 = vpop.eup %1380 }
 0x438   :  { %v540_v17 = vadd.f32 1.0, %v1381_v15  ;;  %v543_v20 = vmul.f32 -0.5, %v1381_v15  ;;  %v546_v29 = vand.u32 2147483647, %v1381_v15 }
 0x43a   :  { %1384 = vlog2.f32 %v540_v17  ;;  %v544_v22 = vadd.f32 1.0, %v543_v20  ;;  %vm547_vm1 = vcmp.lt.f32.partialorder %v546_v29, 0.0004427343  ;;  %v1309_v20 = vld [vmem:[%s1850_s8 + $0x74] ss:$8 sps:$4 sm:$0xff]  }
 0x43b   :  { %v1383_v18 = vpop.eup %1382  ;;  %v1316_v29 = vld [vmem:[%s1850_s8 + $0x40] ss:$8 sps:$4 sm:$0xff]  }
 0x43c   :  { %v549_v19 = vadd.f32 1.0, %v1383_v18  ;;  %v552_v23 = vmul.f32 -0.5, %v1383_v18  ;;  %v545_v32 = vmul.f32 %v1381_v15, %v544_v22  ;;  %v555_v35 = vand.u32 2147483647, %v1383_v18  ;;  %v1313_v22 = vld [vmem:[%s1850_s8 + $0x50] ss:$8 sps:$4 sm:$0xff]  }
 0x43e   :  { %1386 = vlog2.f32 %v549_v19  ;;  %v553_v34 = vadd.f32 1.0, %v552_v23  ;;  %vm556_vm2 = vcmp.lt.f32.partialorder %v555_v35, 0.0004427343  ;;  %v1318_v23 = vld [vmem:[%s1850_s8 + $0x44] ss:$8 sps:$4 sm:$0xff]  }
 0x43f   :  { %1388 = vtanh.f32 %v351_v4  ;;  %v1327_v35 = vld [vmem:[%s1850_s8 + $0x14] ss:$8 sps:$4 sm:$0xff]  }
 0x440   :  { %v554_v43 = vmul.f32 %v1383_v18, %v553_v34  ;;  %v1322_v34 = vld [vmem:[%s1850_s8 + $0x20] ss:$8 sps:$4 sm:$0xff]  }
 0x447   :  { %v1385_v21 = vpop.eup %1384 }
 0x448   :  { %v542_v30 = vmul.f32 0.6931472, %v1385_v21  ;;  %v1307_v21 = vld [vmem:[%s1850_s8 + $0x70] ss:$8 sps:$4 sm:$0xff]  }
 0x44a   :  { %v548_v36 = vsel %vm547_vm1, %v545_v32, %v542_v30  ;;  %v1321_v30 = vld [vmem:[%s1850_s8 + $0x34] ss:$8 sps:$4 sm:$0xff]   ;;  %v1324_v32 = vld [vmem:[%s1850_s8 + $0x24] ss:$8 sps:$4 sm:$0xff]  }
 0x44b   :  { %v1387_v31 = vpop.eup %1386  ;;  %v558_v45 = vadd.f32 %v548_v36, %v530_v39  ;;  %v1325_v36 = vld [vmem:[%s1850_s8 + $0x10] ss:$8 sps:$4 sm:$0xff]   ;;  %v1328_v39 = vld [vmem:[%s1850_s8] ss:$8 sps:$4 sm:$0xff]  }
 0x44c   :  { %v551_v37 = vmul.f32 0.6931472, %v1387_v31  ;;  %v1389_v5 = vpop.eup %1388  ;;  %v1319_v31 = vld [vmem:[%s1850_s8 + $0x30] ss:$8 sps:$4 sm:$0xff]  }
 0x44d   :  { %v355_v16 = vadd.f32 1.0, %v1389_v5 }
 0x44e   :  { %v557_v50 = vsel %vm556_vm2, %v554_v43, %v551_v37  ;;  %v1330_v37 = vld [vmem:[%s1850_s8 + $0x4] ss:$8 sps:$4 sm:$0xff]   ;;  %v727_v43 = vrot.slane %v1761_v42, %v364_v26 }
 0x44f   :  { %v357_v9 = vmul.f32 0.5, %v355_v16 }
 0x496   :  { %v563_v56 = vpop.permute.xlu0 %562 }
 0x497   :  { %v568_v57 = vmul.f32 %v563_v56, %v517_v53  ;;  %v1306_v53 = vld [vmem:[%s1849_s6 + $0x4] ss:$8 sps:$4 sm:$0xff]   ;;  %v593_v56 = vmul.f32 %v558_v45, %v1640_v48  ;;  %v352_v48 = vmul.f32 0.5, %v1648_v51 }
 0x498   :  { %684 = vmatprep.subr.bf16.mxu0 %v1306_v53 }
 0x499   :  { %579 = vrot.lane.b32.xlu0 %v568_v57, %s1423_s1  ;;  %v571_v60 = vsel %vm570_vm15, %v568_v57, 0.0  ;;  %685 = vmatpush1.bf16.msra.mxu0 %v1304_v54  ;;  %1390 = vtanh.f32 %v352_v48 }
 0x49a   :  { %v565_v58 = vpop.permute.xlu1 %564  ;;  %843 = vmatprep.subr.bf16.mxu0 %v1309_v20 }
 0x49b   :  { %v569_v59 = vmul.f32 %v565_v58, %v521_v55  ;;  %v559_v55 = vadd.f32 %v557_v50, %v531_v52 }
 0x49d   :  { %581 = vrot.lane.b32.xlu1 %v569_v59, %s1423_s1  ;;  %v574_v61 = vsel %vm570_vm15, %v569_v59, 0.0 }
 0x4a6   :  { %v1391_v11 = vpop.eup %1390 }
 0x4a7   :  { %v356_v7 = vadd.f32 1.0, %v1391_v11 }
 0x4a9   :  { %v358_v10 = vmul.f32 0.5, %v356_v7 }
 0x4ab   :  { %v360_v14 = vmul.f32 %v358_v10, %v1648_v51  ;;  %v1310_v51 = vld [vmem:[%s1850_s8 + $0x60] ss:$8 sps:$4 sm:$0xff]  }
 0x4b8   :  { %572 = vadd.xlane.f32.xlu0 %v571_v60 }
 0x4c1   :  { %575 = vadd.xlane.f32.xlu1 %v574_v61  ;;  %v594_v61 = vmul.f32 %v559_v55, %v1642_v49  ;;  %v359_v49 = vmul.f32 %v357_v9, %v1638_v33  ;;  %v1312_v33 = vld [vmem:[%s1850_s8 + $0x64] ss:$8 sps:$4 sm:$0xff]  }
 0x50b   :  { %v580_v62 = vpop.permute.xlu0 %579 }
 0x50c   :  { %v585_v1 = vsel %vm570_vm15, %v580_v62, 0.0 }
 0x50d   :  { %586 = vadd.xlane.f32.xlu0 %v585_v1 }
 0x50f   :  { %v582_v47 = vpop.permute.xlu1 %581 }
 0x510   :  { %v588_v2 = vsel %vm570_vm15, %v582_v47, 0.0 }
 0x511   :  { %589 = vadd.xlane.f32.xlu0 %v588_v2 }
 0x541   :  { %v573_v46 = vpop.xlane.xlu0 %572 }
 0x54a   :  { %v576_v60 = vpop.xlane.xlu1 %575 }
 0x596   :  { %v587_v57 = vpop.xlane.xlu0 %586 }
 0x597   :  { %v591_v58 = vsel %vm279_vm3, %v573_v46, %v587_v57 }
 0x598   :  { %v595_v59 = vmul.f32 %v593_v56, %v591_v58 }
 0x59a   :  { %v590_v62 = vpop.xlane.xlu0 %589  ;;  %v603_v1 = vadd.f32 %v601_v27, %v595_v59 }
 0x59b   :  { %v592_v47 = vsel %vm279_vm3, %v576_v60, %v590_v62 }
 0x59c   :  { %v596_v2 = vmul.f32 %v594_v61, %v592_v47  ;;  %607 = vrot.lane.b32.xlu1 %v603_v1, %s1422_s0 }
 0x59e   :  { %v604_v63 = vadd.f32 %v602_v3, %v596_v2 }
 0x5a0   :  { %609 = vrot.lane.b32.xlu0 %v604_v63, %s1422_s0 }
 0x60e   :  { %v608_v8 = vpop.permute.xlu1 %607 }
 0x60f   :  { %v613_v12 = vadd.f32 %v608_v8, %v603_v1 }
 0x611   :  { %v615_v17 = vmul.f32 %v613_v12, %v359_v49  ;;  %v1332_v49 = vld [vmem:[%s1852_s9 + $0x10] sm:$0xff]  }
 0x612   :  { %v610_v13 = vpop.permute.xlu0 %609 }
 0x613   :  { %v614_v15 = vadd.f32 %v610_v13, %v604_v63  ;;  %v1331_v13 = vld [vmem:[%s1852_s9 + $0x18] sm:$0xff]  }
 0x614   :  { %1239 = vmatpush3.bf16.msra.mxu1 %v1331_v13 }
 0x615   :  { %v616_v18 = vmul.f32 %v614_v15, %v360_v14  ;;  %1240 = vmatprep.subr.bf16.mxu1 %v1420_v0  ;;  %v889_v14 = vrot.slane %v1761_v42, %v526_v6 }
 0x617   :  { %v617_v19 = vpack.c.bf16 %v616_v18, %v615_v17 }
 0x618   :  { %1241 = vmatpush3.bf16.msra.mxu1 %v1332_v49 }
 0x619   :  { %1191 = vmatmul.mubr.msk.bf16.vlgmr.msra.gmra.mxu0 %vm666_vm4, %v617_v19  ;;  %1242 = vmatprep.subr.bf16.mxu1 %v1420_v0 }
 0x61a   :  { %875 = vmatprep.mubr.bf16.mxu0 %v1424_v38  ;;  %844 = vmatpush1.bf16.msra.mxu0 %v1307_v21  ;;  %v1315_v38 = vld [vmem:[%s1850_s8 + $0x54] ss:$8 sps:$4 sm:$0xff]  }
 0x61b   :  { %845 = vmatprep.subr.bf16.mxu0 %v1312_v33 }
 0x61e   :  { %846 = vmatpush1.bf16.msra.mxu0 %v1310_v51 }
 0x61f   :  { %847 = vmatprep.subr.bf16.mxu0 %v1315_v38 }
 0x622   :  { %848 = vmatpush1.bf16.msra.mxu0 %v1313_v22 }
 0x623   :  { %849 = vmatprep.subr.bf16.mxu0 %v1318_v23 }
 0x626   :  { %850 = vmatpush1.bf16.msra.mxu0 %v1316_v29 }
 0x627   :  { %851 = vmatprep.subr.bf16.mxu0 %v1321_v30 }
 0x62a   :  { %852 = vmatpush1.bf16.msra.mxu0 %v1319_v31 }
 0x62b   :  { %853 = vmatprep.subr.bf16.mxu0 %v1324_v32 }
 0x62e   :  { %854 = vmatpush1.bf16.msra.mxu0 %v1322_v34 }
 0x62f   :  { %855 = vmatprep.subr.bf16.mxu0 %v1327_v35 }
 0x632   :  { %856 = vmatpush1.bf16.msra.mxu0 %v1325_v36 }
 0x633   :  { %857 = vmatprep.subr.bf16.mxu0 %v1330_v37 }
 0x636   :  { %858 = vmatpush1.bf16.msra.mxu0 %v1328_v39 }
 0x6d9   :  { %v704_v45 = vpop.f32.mrf.mxu0 }
 0x6da   :  { %v728_v46 = vmul.f32 %v727_v43, %v704_v45 }
 0x6db   :  { %v1769_v50 = vpop.f32.mrf.mxu0 }
 0x6dc   :  { %v734_v52 = vadd.f32 %v733_v44, %v728_v46 }
 0x6dd   :  { %v708_v24 = vpop.f32.mrf.mxu0 }
 0x6de   :  { %v736_v53 = vmul.f32 0.5, %v734_v52  ;;  %v729_v54 = vmul.f32 %v727_v43, %v708_v24  ;;  %v1333_v24 = vld [vmem:[%s1852_s9 + $0x8] sm:$0xff]  }
 0x6df   :  { %v1777_v1 = vpop.f32.mrf.mxu0  ;;  %1243 = vmatpush3.bf16.msra.mxu1 %v1333_v24 }
 0x6e0   :  { %1392 = vtanh.f32 %v736_v53  ;;  %v735_v55 = vadd.f32 %v733_v44, %v729_v54  ;;  %1244 = vmatprep.subr.bf16.mxu1 %v1420_v0 }
 0x6e2   :  { %v737_v56 = vmul.f32 0.5, %v735_v55 }
 0x6e4   :  { %1394 = vtanh.f32 %v737_v56 }
 0x6ed   :  { %v1393_v57 = vpop.eup %1392 }
 0x6ee   :  { %v740_v58 = vadd.f32 1.0, %v1393_v57  ;;  %v961_v57 = vrot.slane %v1761_v42, %v599_v41 }
 0x6f0   :  { %v742_v26 = vmul.f32 0.5, %v740_v58  ;;  %v1334_v58 = vld [vmem:[%s1852_s9] sm:$0xff]  }
 0x6f1   :  { %v1395_v59 = vpop.eup %1394  ;;  %1245 = vmatpush3.bf16.msra.mxu1 %v1334_v58 }
 0x6f2   :  { %v741_v27 = vadd.f32 1.0, %v1395_v59  ;;  %v1771_v61 = vmul.f32 %v742_v26, %v734_v52  ;;  %1250 = vmatprep.subr.bf16.mxu1 %v1420_v0 }
 0x6f4   :  { %v743_v60 = vmul.f32 0.5, %v741_v27 }
 0x6f6   :  { %v1773_v28 = vmul.f32 %v743_v60, %v735_v55 }
 0x6f8   :  { %v746_v62 = vpack.c.bf16 %v1773_v28, %v1771_v61 }
 0x6fa   :  { %876 = vmatmul.mubr.bf16.vlgmr.msra.gmra.mxu0 %v746_v62 }
 0x7ba   :  { %v877_v47 = vpop.f32.mrf.mxu0 }
 0x7bb   :  { %v890_v15 = vadd.f32 %v889_v14, %v877_v47  ;;  %v962_v47 = vmul.f32 %v961_v57, %v1771_v61 }
 0x7bc   :  { %v879_v2 = vpop.f32.mrf.mxu0 }
 0x7bd   :  { %924 = vrot.lane.b32.xlu1 %v879_v2, %s1425_s4  ;;  %v894_v17 = vand.u32 2147483647, %v890_v15  ;;  %v892_v46 = vmax.f32 %v890_v15, 0.0 }
 0x7be   :  { %v881_v3 = vpop.f32.mrf.mxu0 }
 0x7bf   :  { %v891_v18 = vadd.f32 %v889_v14, %v881_v3  ;;  %v896_v19 = vsub.f32 0.0, %v894_v17 }
 0x7c0   :  { %v883_v63 = vpop.f32.mrf.mxu0 }
 0x7c1   :  { %926 = vrot.lane.b32.xlu1 %v883_v63, %s1425_s4  ;;  %v895_v20 = vand.u32 2147483647, %v891_v18  ;;  %v898_v21 = vmul.f32 1.442695, %v896_v19  ;;  %v893_v56 = vmax.f32 %v891_v18, 0.0 }
 0x7c3   :  { %v897_v33 = vsub.f32 0.0, %v895_v20  ;;  %1396 = vpow2.f32 %v898_v21  ;;  %v1335_v20 = vld [vmem:[%s1853_s11] sm:$0xff]  }
 0x7c5   :  { %v900_v51 = vmul.f32 1.442695, %v897_v33 }
 0x7c7   :  { %1398 = vpow2.f32 %v900_v51 }
 0x7d0   :  { %v1397_v38 = vpop.eup %1396 }
 0x7d1   :  { %v902_v22 = vadd.f32 1.0, %v1397_v38  ;;  %v905_v30 = vmul.f32 -0.5, %v1397_v38  ;;  %v908_v34 = vand.u32 2147483647, %v1397_v38 }
 0x7d3   :  { %1400 = vlog2.f32 %v902_v22  ;;  %v906_v32 = vadd.f32 1.0, %v905_v30  ;;  %vm909_vm5 = vcmp.lt.f32.partialorder %v908_v34, 0.0004427343 }
 0x7d4   :  { %v1399_v23 = vpop.eup %1398 }
 0x7d5   :  { %v911_v29 = vadd.f32 1.0, %v1399_v23  ;;  %v914_v6 = vmul.f32 -0.5, %v1399_v23  ;;  %v907_v37 = vmul.f32 %v1397_v38, %v906_v32  ;;  %v917_v43 = vand.u32 2147483647, %v1399_v23 }
 0x7d7   :  { %1402 = vlog2.f32 %v911_v29  ;;  %v915_v39 = vadd.f32 1.0, %v914_v6  ;;  %vm918_vm6 = vcmp.lt.f32.partialorder %v917_v43, 0.0004427343 }
 0x7d9   :  { %v916_v52 = vmul.f32 %v1399_v23, %v915_v39 }
 0x7e0   :  { %v1401_v31 = vpop.eup %1400 }
 0x7e1   :  { %v904_v35 = vmul.f32 0.6931472, %v1401_v31 }
 0x7e3   :  { %v910_v44 = vsel %vm909_vm5, %v907_v37, %v904_v35 }
 0x7e4   :  { %v1403_v36 = vpop.eup %1402  ;;  %v920_v53 = vadd.f32 %v910_v44, %v892_v46 }
 0x7e5   :  { %v913_v45 = vmul.f32 0.6931472, %v1403_v36 }
 0x7e6   :  { %v954_v26 = vmul.f32 %v920_v53, %v1771_v61  ;;  %v713_v61 = vmul.f32 0.5, %v1769_v50 }
 0x7e7   :  { %v919_v55 = vsel %vm918_vm6, %v916_v52, %v913_v45 }
 0x7e8   :  { %v921_v59 = vadd.f32 %v919_v55, %v893_v56  ;;  %1404 = vtanh.f32 %v713_v61 }
 0x7ea   :  { %v955_v41 = vmul.f32 %v921_v59, %v1773_v28 }
 0x82f   :  { %v925_v4 = vpop.permute.xlu1 %924 }
 0x830   :  { %v930_v48 = vmul.f32 %v925_v4, %v879_v2  ;;  %v963_v4 = vmul.f32 %v961_v57, %v1773_v28 }
 0x832   :  { %940 = vrot.lane.b32.xlu0 %v930_v48, %s1423_s1  ;;  %v932_v16 = vsel %vm570_vm15, %v930_v48, 0.0 }
 0x833   :  { %v927_v5 = vpop.permute.xlu1 %926 }
 0x834   :  { %v931_v11 = vmul.f32 %v927_v5, %v883_v63  ;;  %v714_v5 = vmul.f32 0.5, %v1777_v1 }
 0x836   :  { %942 = vrot.lane.b32.xlu1 %v931_v11, %s1423_s1  ;;  %v935_v7 = vsel %vm570_vm15, %v931_v11, 0.0  ;;  %1406 = vtanh.f32 %v714_v5  ;;  %v1405_v11 = vpop.eup %1404 }
 0x851   :  { %933 = vadd.xlane.f32.xlu0 %v932_v16  ;;  %v1407_v16 = vpop.eup %1406 }
 0x85a   :  { %936 = vadd.xlane.f32.xlu1 %v935_v7  ;;  %v717_v7 = vadd.f32 1.0, %v1405_v11 }
 0x8a4   :  { %v941_v8 = vpop.permute.xlu0 %940 }
 0x8a5   :  { %v946_v9 = vsel %vm570_vm15, %v941_v8, 0.0  ;;  %v718_v8 = vadd.f32 1.0, %v1407_v16 }
 0x8a6   :  { %947 = vadd.xlane.f32.xlu0 %v946_v9 }
 0x8a8   :  { %v943_v10 = vpop.permute.xlu1 %942 }
 0x8a9   :  { %v949_v12 = vsel %vm570_vm15, %v943_v10, 0.0  ;;  %v719_v10 = vmul.f32 0.5, %v717_v7 }
 0x8aa   :  { %950 = vadd.xlane.f32.xlu0 %v949_v12  ;;  %v720_v12 = vmul.f32 0.5, %v718_v8 }
 0x8ab   :  { %v721_v28 = vmul.f32 %v719_v10, %v1769_v50  ;;  %v1208_v50 = vld [vmem:[%s1854_s10] ss:$0 sm:$0xff] }
 0x8ac   :  { %v722_v14 = vmul.f32 %v720_v12, %v1777_v1 }
 0x8da   :  { %v934_v54 = vpop.xlane.xlu0 %933 }
 0x8e3   :  { %v937_v25 = vpop.xlane.xlu1 %936 }
 0x92f   :  { %v948_v27 = vpop.xlane.xlu0 %947 }
 0x930   :  { %v952_v60 = vsel %vm279_vm3, %v934_v54, %v948_v27 }
 0x931   :  { %v956_v62 = vmul.f32 %v954_v26, %v952_v60 }
 0x933   :  { %v951_v42 = vpop.xlane.xlu0 %950  ;;  %v964_v2 = vadd.f32 %v962_v47, %v956_v62 }
 0x934   :  { %v953_v3 = vsel %vm279_vm3, %v937_v25, %v951_v42 }
 0x935   :  { %v957_v63 = vmul.f32 %v955_v41, %v953_v3  ;;  %968 = vrot.lane.b32.xlu1 %v964_v2, %s1422_s0 }
 0x937   :  { %v965_v48 = vadd.f32 %v963_v4, %v957_v63 }
 0x939   :  { %970 = vrot.lane.b32.xlu0 %v965_v48, %s1422_s0 }
 0x9a7   :  { %v969_v9 = vpop.permute.xlu1 %968 }
 0x9a8   :  { %v974_v13 = vadd.f32 %v969_v9, %v964_v2 }
 0x9aa   :  { %v976_v17 = vmul.f32 %v974_v13, %v721_v28 }
 0x9ab   :  { %v971_v49 = vpop.permute.xlu0 %970 }
 0x9ac   :  { %v975_v15 = vadd.f32 %v971_v49, %v965_v48 }
 0x9ae   :  { %v977_v18 = vmul.f32 %v975_v15, %v722_v14 }
 0x9b0   :  { %v978_v19 = vpack.c.bf16 %v977_v18, %v976_v17 }
 0x9b2   :  { %1247 = vmatmul.mubr.msk.bf16.vlgmr.msra.gmra.mxu1 %vm666_vm4, %v978_v19 }
 0x9b3   :  { %1252 = vmatprep.mubr.msk.bf16.mxu1 %vm1421_vm0, %v1420_v0  ;;  %1251 = vmatpush3.bf16.msra.mxu1 %v1335_v20  ;;  %v1214_v0 = vld [vmem:[%s1855_s12] ss:$0 sm:$0xff]  ;;  %vm1126_vm0 = vcmp.lt.s32.totalorder %v1675_v40, 4 }
 0xa72   :  { %v1055_v21 = vpop.f32.mrf.mxu1 }
 0xa73   :  { %v1056_v33 = vadd.f32 %v1208_v50, %v1055_v21 }
 0xa74   :  { %v1248_v1 = vpop.f32.mrf.mxu1 }
 0xa75   :  { %v1062_v23 = vmax.f32 %v1056_v33, 0.0 }
 0xa76   :  { %v1058_v51 = vpop.f32.mrf.mxu1 }
 0xa77   :  { %v1059_v38 = vadd.f32 %v1208_v50, %v1058_v51 }
 0xa78   :  { %v1249_v22 = vpop.f32.mrf.mxu1 }
 0xa79   :  { %v1063_v29 = vmax.f32 %v1059_v38, 0.0 }
 0xa7b   :  { %v1064_v30 = vpack.c.bf16 %v1063_v29, %v1062_v23 }
 0xa7d   :  { %1253 = vmatmul.mubr.msk.bf16.vlgmr.msra.gmra.mxu1 %vm570_vm15, %v1064_v30 }
 0xb3d   :  { %v1117_v31 = vpop.f32.mrf.mxu1 }
 0xb3e   :  { %v1118_v32 = vadd.f32 %v1214_v0, %v1117_v31 }
 0xb3f   :  { %v1254_v6 = vpop.f32.mrf.mxu1 }
 0xb40   :  { %1408 = vtanh.f32 %v1118_v32 }
 0xb41   :  { %v1120_v34 = vpop.f32.mrf.mxu1 }
 0xb42   :  { %v1121_v35 = vadd.f32 %v1214_v0, %v1120_v34 }
 0xb43   :  { %v1255_v36 = vpop.f32.mrf.mxu1 }
 0xb44   :  { %1410 = vtanh.f32 %v1121_v35 }
 0xb4d   :  { %v1409_v37 = vpop.eup %1408 }
 0xb4e   :  { %v1127_v39 = vsel %vm1126_vm0, %v1409_v37, -1e+30 }
 0xb4f   :  { %1129 = vmax.xlane.f32.xlu1 %v1127_v39 }
 0xb51   :  { %v1411_v43 = vpop.eup %1410 }
 0xb52   :  { %v1128_v44 = vsel %vm1126_vm0, %v1411_v43, -1e+30 }
 0xb53   :  { %1131 = vmax.xlane.f32.xlu0 %v1128_v44 }
 0xbd8   :  { %v1130_v45 = vpop.xlane.xlu1 %1129 }
 0xbd9   :  { %v1133_v46 = vsub.f32 %v1127_v39, %v1130_v45 }
 0xbdb   :  { %v1135_v52 = vmul.f32 1.442695, %v1133_v46 }
 0xbdc   :  { %v1132_v24 = vpop.xlane.xlu0 %1131 }
 0xbdd   :  { %1412 = vpow2.f32 %v1135_v52  ;;  %v1134_v53 = vsub.f32 %v1128_v44, %v1132_v24 }
 0xbdf   :  { %v1137_v54 = vmul.f32 1.442695, %v1134_v53 }
 0xbe1   :  { %1414 = vpow2.f32 %v1137_v54 }
 0xbea   :  { %v1413_v55 = vpop.eup %1412 }
 0xbeb   :  { %1139 = vadd.xlane.f32.xlu1 %v1413_v55 }
 0xbee   :  { %v1415_v56 = vpop.eup %1414 }
 0xbef   :  { %1141 = vadd.xlane.f32.xlu0 %v1415_v56 }
 0xc74   :  { %v1140_v57 = vpop.xlane.xlu1 %1139 }
 0xc75   :  { %1416 = vlog2.f32 %v1140_v57 }
 0xc78   :  { %v1142_v40 = vpop.xlane.xlu0 %1141 }
 0xc79   :  { %1418 = vlog2.f32 %v1142_v40 }
 0xc82   :  { %v1417_v58 = vpop.eup %1416 }
 0xc83   :  { %v1144_v59 = vmul.f32 0.6931472, %v1417_v58 }
 0xc85   :  { %v1147_v26 = vadd.f32 %v1144_v59, %v1130_v45 }
 0xc86   :  { %v1419_v27 = vpop.eup %1418 }
 0xc87   :  { %v1149_v60 = vsub.f32 %v1127_v39, %v1147_v26  ;;  %v1146_v62 = vmul.f32 0.6931472, %v1419_v27 }
 0xc89   :  { %1151 = vst [vmem:[%s1856_s13] sm:$0xff] %v1149_v60  ;;  %v1148_v47 = vadd.f32 %v1146_v62, %v1132_v24 }
 0xc8b   :  { %v1150_v25 = vsub.f32 %v1128_v44, %v1148_v47 }
 0xc8d   :  { %1152 = vst [vmem:[%s1856_s13 + $0x8] sm:$0xff] %v1150_v25 }

</bundles_post_ra>
